<compile_context>
chip_gen: v7x
topology: tpu7x:2x2x1
jax: 0.10.0
libtpu: 0.0.40
codegen_flags: <defaults>
</compile_context>

<pallas_src>
import functools

import jax
import jax.numpy as jnp
from jax.experimental import pallas as pl
from jax.experimental.pallas import tpu as pltpu

LANE = 128
SUBLANE = 8
TB_MAX = 512            # max batch-tile rows before splitting the grid
VMEM_FLOOR = 32 << 20   # never request less scoped VMEM than ~the default


def _round_up(n, m):
    return ((n + m - 1) // m) * m


# ----------------------------------------------------------------------------
# Parameter packing: pre-transposed (in, out) weights, concatenate Wv|Wi, and
# zero-pad every feature dim to a multiple of 128 lanes. Done once.
# ----------------------------------------------------------------------------
def pack_params(layers):
    kinds, packed = [], []
    for kind, p in layers:
        kinds.append(kind)
        if kind != "masked":
            continue
        fin, fout = p["wv"].shape
        fin_p, fout_p = _round_up(fin, LANE), _round_up(fout, LANE)

        def pad2(a, rows, cols):
            return jnp.pad(a, ((0, rows - a.shape[0]), (0, cols - a.shape[1])))

        wv = pad2(p["wv"], fin_p, fout_p)
        wi = pad2(p["wi"], fin_p, fout_p)
        wm = pad2(p["wm"], fin_p, fout_p)
        bv = pad2(p["bv"], 1, fout_p)
        bi = pad2(p["bi"], 1, fout_p)
        wcat = jnp.concatenate([wv, wi], axis=1)   # (fin_p, 2*fout_p)
        bcat = jnp.concatenate([bv, bi], axis=1)   # (1,     2*fout_p), stays f32
        packed.extend([wcat, bcat, wm])
    return tuple(kinds), packed


# ----------------------------------------------------------------------------
# Fused kernel builder: iterates the layer list at trace time inside one body.
# ----------------------------------------------------------------------------
def _build_kernel(kinds, fin_p, half_widths, carry_dtype):
    num_masked = len(half_widths)

    def kernel(*refs):
        xm_ref, out_ref = refs[0], refs[-1]
        wrefs = refs[1:-1]

        # Single fused (tb, 2*Fin_p) input block; lane-tile-aligned split.
        x = xm_ref[:, :fin_p]
        m = xm_ref[:, fin_p:]
        wi_idx, mj = 0, 0
        for kind in kinds:
            if kind == "masked":
                wcat_ref = wrefs[wi_idx]
                bcat_ref = wrefs[wi_idx + 1]
                wm_ref = wrefs[wi_idx + 2]
                wi_idx += 3
                h = half_widths[mj]
                mj += 1
                # MXU inputs follow the weight dtype (f32/bf16); accumulate f32.
                xd = x.astype(wcat_ref.dtype)
                md = m.astype(wm_ref.dtype)
                vi = jnp.dot(xd, wcat_ref[...],
                             preferred_element_type=jnp.float32)
                vi = vi + bcat_ref[...]          # bias kept f32: no round-trip
                new_m = jnp.dot(md, wm_ref[...],
                                preferred_element_type=jnp.float32)
                # f32 VPU combine; slices are lane-tile aligned (h % 128 == 0).
                x = vi[:, :h] + vi[:, h:] * new_m
                if carry_dtype is not None and mj < num_masked:
                    # Carry activations/mask in the compute dtype between layers
                    # (halves live intermediates; next layer's cast is a no-op).
                    x = x.astype(carry_dtype)
                    m = new_m.astype(carry_dtype)
                else:
                    m = new_m
            elif kind == "relu":
                x = jnp.maximum(x, 0.0)  # fused epilogue, VPU filler
            else:
                # TODO(synk): only elementwise ReLU is supported as a
                # non-MaskedLayer; other nn.Modules need their own in-kernel
                # implementation here.
                raise ValueError(f"unsupported layer kind: {kind}")
        out_ref[...] = x.astype(out_ref.dtype)

    return kernel


# ----------------------------------------------------------------------------
# Wrapper: one pallas_call for the whole MaskedSequential forward pass.
# ----------------------------------------------------------------------------
def masked_sequential(layers, x, mask, *, tb=None, compute_dtype=jnp.bfloat16):
    """Fused forward. x, mask: (B, Fin). Returns final x: (B, Fout_last)."""
    B, Fin = x.shape
    kinds, packed = pack_params(layers)
    masked_params = [p for k, p in layers if k == "masked"]
    assert masked_params, "MaskedSequential needs at least one MaskedLayer"
    assert masked_params[0]["wv"].shape[0] == Fin
    Fout = masked_params[-1]["wv"].shape[1]

    Fin_p = _round_up(Fin, LANE)
    Fout_p = _round_up(Fout, LANE)
    half_widths = tuple(_round_up(p["wv"].shape[1], LANE) for p in masked_params)

    # bf16 MXU inputs (f32 accumulate in-kernel) on all generations; biases
    # (every 3rd packed entry, index % 3 == 1) stay f32.
    if compute_dtype is not None:
        packed = [w if i % 3 == 1 else w.astype(compute_dtype)
                  for i, w in enumerate(packed)]
    act_dtype = compute_dtype if compute_dtype is not None else x.dtype
    in_itemsize = jnp.dtype(act_dtype).itemsize
    out_itemsize = jnp.dtype(x.dtype).itemsize

    def _padded_bytes(a):  # account for (8,128) VMEM ref padding
        r = _round_up(a.shape[0], SUBLANE)
        c = _round_up(a.shape[1], LANE)
        return r * c * a.dtype.itemsize

    w_bytes = sum(_padded_bytes(w) for w in packed)  # single-buffered residents
    max_w = max(half_widths + (Fin_p,))

    def vmem_estimate(tb_):
        io = (2 * tb_ * 2 * Fin_p * in_itemsize      # double-buffered x|mask tile
              + 2 * tb_ * Fout_p * out_itemsize)     # double-buffered out tile
        interm = 5 * tb_ * max_w * 4                 # vi(2W) + x + m + new_m, f32
        return int(1.2 * (io + w_bytes + interm))    # ~20% headroom

    try:
        vmem_cap = int(getattr(pltpu.get_tpu_info(), "vmem_capacity_bytes"))
    except Exception:
        vmem_cap = 64 << 20          # conservative: v7x has 64 MiB / TensorCore
    budget = int(0.8 * vmem_cap)

    # Balanced batch tiling: n near-equal 8-row-aligned tiles (<= ~7*n rows of
    # padding) instead of padding up to a multiple of TB_MAX; keep >= 2 (even)
    # grid steps when possible so both v7x TensorCores get work; shrink tb to
    # the VMEM budget rather than relying on the default scoped limit.
    B8 = _round_up(B, SUBLANE)
    if tb is None:
        n = pl.cdiv(B8, TB_MAX)
        if B8 >= 2 * SUBLANE:
            n = max(n, 2)
            if n % 2:
                n += 1
        n = max(1, min(n, B8 // SUBLANE))
        tb = _round_up(pl.cdiv(B8, n), SUBLANE)
        while tb > SUBLANE and vmem_estimate(tb) > budget:
            tb = _round_up(tb // 2, SUBLANE)
    else:
        tb = _round_up(tb, SUBLANE)
    grid_n = pl.cdiv(B8, tb)
    B_p = grid_n * tb

    vmem_limit = int(min(vmem_cap, max(vmem_estimate(tb), VMEM_FLOOR)))

    # Pad activations once at the network boundary; zero feature columns stay
    # exactly zero through every fused layer, so the final slice is exact.
    mask = mask.astype(x.dtype)
    xp = jnp.pad(x, ((0, B_p - B), (0, Fin_p - Fin))).astype(act_dtype)
    mp = jnp.pad(mask, ((0, B_p - B), (0, Fin_p - Fin))).astype(act_dtype)
    xm = jnp.concatenate([xp, mp], axis=1)   # one (B_p, 2*Fin_p) input block

    in_spec = pl.BlockSpec((tb, 2 * Fin_p), lambda i: (i, 0))
    out_spec = pl.BlockSpec((tb, Fout_p), lambda i: (i, 0))
    # Resident weights/biases: constant index_map + SINGLE buffer (never
    # re-fetched, so the default double buffer is pure VMEM waste).
    # TODO(synk): if sum(padded weights) exceeds ~40 MiB (deep/wide nets),
    # switch these to memory_space=pl.ANY + per-layer double-buffered DMA so
    # only ~2 layers of weights are resident in v7x's 64 MiB VMEM.
    w_specs = [pl.BlockSpec(w.shape, lambda i: (0, 0),
                            pipeline_mode=pl.Buffered(1))
               for w in packed]

    out = pl.pallas_call(
        _build_kernel(kinds, Fin_p, half_widths, compute_dtype),
        out_shape=jax.ShapeDtypeStruct((B_p, Fout_p), x.dtype),
        grid_spec=pltpu.PrefetchScalarGridSpec(
            num_scalar_prefetch=0,
            grid=(grid_n,),
            in_specs=[in_spec] + w_specs,
            out_specs=out_spec,
        ),
        compiler_params=pltpu.CompilerParams(
            dimension_semantics=("parallel",),
            vmem_limit_bytes=vmem_limit),
    )(xm, *packed)
    # NOTE: padded tail rows of the unsliced output hold bias-propagated values
    # (not zeros); they never mix into real rows and are sliced off here.
    return out[:B, :Fout]


# ----------------------------------------------------------------------------
# Deterministic parameter init (mirrors nn.Linear defaults + std=0.02 mask
# projection), stored pre-transposed as (in, out).
# ----------------------------------------------------------------------------
def init_masked_layer(key, in_features, out_features, dtype=jnp.float32):
    k1, k2, k3, k4, k5 = jax.random.split(key, 5)
    bound = 1.0 / jnp.sqrt(in_features)
    wv = jax.random.uniform(k1, (in_features, out_features), dtype, -bound, bound)
    bv = jax.random.uniform(k2, (1, out_features), dtype, -bound, bound)
    wi = jax.random.uniform(k3, (in_features, out_features), dtype, -bound, bound)
    bi = jax.random.uniform(k4, (1, out_features), dtype, -bound, bound)
    wm = 0.02 * jax.random.normal(k5, (in_features, out_features), dtype)
    return {"wv": wv, "bv": bv, "wi": wi, "bi": bi, "wm": wm}


# Pure-JAX reference for correctness checking (mirrors the PyTorch module).
def masked_sequential_ref(layers, x, mask):
    mask = mask.astype(x.dtype)
    for kind, p in layers:
        if kind == "masked":
            out = x @ p["wv"] + p["bv"]
            interp = x @ p["wi"] + p["bi"]
            mask = mask @ p["wm"]
            x = out + interp * mask
        elif kind == "relu":
            x = jnp.maximum(x, 0.0)
    return x


if __name__ == "__main__":
    key = jax.random.PRNGKey(0)
    k_x, k_m, k_l1, k_l2 = jax.random.split(key, 4)

    batch, in_features, hidden, out_features = 8, 32, 32, 32

    x = jax.random.normal(k_x, (batch, in_features), jnp.float32)
    mask = (jax.random.uniform(k_m, (batch, in_features)) > 0.5).astype(jnp.float32)

    layers = [
        ("masked", init_masked_layer(k_l1, in_features, hidden)),
        ("relu", None),
        ("masked", init_masked_layer(k_l2, hidden, out_features)),
    ]

    y_ref = masked_sequential_ref(layers, x, mask)

    # Exact f32 path (bitwise-faithful structure check).
    run_f32 = jax.jit(functools.partial(masked_sequential, layers,
                                        compute_dtype=None))
    y32 = run_f32(x, mask)
    jax.block_until_ready(y32)
    assert y32.shape == (batch, out_features)
    assert jnp.allclose(y32, y_ref, atol=1e-5, rtol=1e-5), "f32 mismatch vs ref"

    # Default path: bf16 MXU inputs, f32 accumulate, f32 biases.
    run_bf16 = jax.jit(functools.partial(masked_sequential, layers))
    y16 = run_bf16(x, mask)
    jax.block_until_ready(y16)
    assert y16.shape == (batch, out_features)
    assert jnp.allclose(y16, y_ref, atol=8e-2, rtol=8e-2), "bf16 mismatch vs ref"

    print("KERNEL_OK")
</pallas_src>

<mosaic_0001>
module attributes {stable_mosaic.version = 11 : i64} {
  func.func @kernel(%arg0: i32, %arg1: memref<8x256xf32, #tpu.memory_space<vmem>>, %arg2: memref<128x256xf32, #tpu.memory_space<vmem>>, %arg3: memref<1x256xf32, #tpu.memory_space<vmem>>, %arg4: memref<128x128xf32, #tpu.memory_space<vmem>>, %arg5: memref<128x256xf32, #tpu.memory_space<vmem>>, %arg6: memref<1x256xf32, #tpu.memory_space<vmem>>, %arg7: memref<128x128xf32, #tpu.memory_space<vmem>>, %arg8: memref<8x128xf32, #tpu.memory_space<vmem>>) attributes {dimension_semantics = [#tpu.dimension_semantics<parallel>], iteration_bounds = array<i64: 1>, scalar_prefetch = 0 : i64, scratch_operands = 0 : i64, tpu.core_type = #tpu.core_type<tc>, window_params = [{transform_indices = @transform_0, window_bounds = array<i64: 8, 256>}, {pipeline_mode = #tpu.pipeline_mode<synchronous>, transform_indices = @transform_1, window_bounds = array<i64: 128, 256>}, {pipeline_mode = #tpu.pipeline_mode<synchronous>, transform_indices = @transform_2, window_bounds = array<i64: 1, 256>}, {pipeline_mode = #tpu.pipeline_mode<synchronous>, transform_indices = @transform_3, window_bounds = array<i64: 128, 128>}, {pipeline_mode = #tpu.pipeline_mode<synchronous>, transform_indices = @transform_4, window_bounds = array<i64: 128, 256>}, {pipeline_mode = #tpu.pipeline_mode<synchronous>, transform_indices = @transform_5, window_bounds = array<i64: 1, 256>}, {pipeline_mode = #tpu.pipeline_mode<synchronous>, transform_indices = @transform_6, window_bounds = array<i64: 128, 128>}, {transform_indices = @transform_7, window_bounds = array<i64: 8, 128>}]} {
    %c0 = arith.constant 0 : index
    %c0_0 = arith.constant 0 : index
    %0 = vector.load %arg1[%c0, %c0_0] : memref<8x256xf32, #tpu.memory_space<vmem>>, vector<8x128xf32>
    %c0_1 = arith.constant 0 : index
    %c128 = arith.constant 128 : index
    %1 = vector.load %arg1[%c0_1, %c128] : memref<8x256xf32, #tpu.memory_space<vmem>>, vector<8x128xf32>
    %c0_2 = arith.constant 0 : index
    %c0_3 = arith.constant 0 : index
    %2 = vector.load %arg2[%c0_2, %c0_3] : memref<128x256xf32, #tpu.memory_space<vmem>>, vector<128x256xf32>
    %cst = arith.constant dense<0.000000e+00> : vector<8x256xf32>
    %3 = tpu.matmul %0, %2, %cst {dimension_numbers = #tpu.dot_dimension_numbers<[1], [0], [0], [1], [0, 0, 1, 1], [], []>} : vector<8x128xf32>, vector<128x256xf32>, vector<8x256xf32> -> vector<8x256xf32>
    %c0_4 = arith.constant 0 : index
    %c0_5 = arith.constant 0 : index
    %4 = vector.load %arg3[%c0_4, %c0_5] : memref<1x256xf32, #tpu.memory_space<vmem>>, vector<1x256xf32>
    %5 = vector.broadcast %4 : vector<1x256xf32> to vector<8x256xf32>
    %6 = arith.addf %3, %5 : vector<8x256xf32>
    %c0_6 = arith.constant 0 : index
    %c0_7 = arith.constant 0 : index
    %7 = vector.load %arg4[%c0_6, %c0_7] : memref<128x128xf32, #tpu.memory_space<vmem>>, vector<128x128xf32>
    %cst_8 = arith.constant dense<0.000000e+00> : vector<8x128xf32>
    %8 = tpu.matmul %1, %7, %cst_8 {dimension_numbers = #tpu.dot_dimension_numbers<[1], [0], [0], [1], [0, 0, 1, 1], [], []>} : vector<8x128xf32>, vector<128x128xf32>, vector<8x128xf32> -> vector<8x128xf32>
    %9 = vector.extract_strided_slice %6 {offsets = [0, 0], sizes = [8, 128], strides = [1, 1]} : vector<8x256xf32> to vector<8x128xf32>
    %10 = vector.extract_strided_slice %6 {offsets = [0, 128], sizes = [8, 128], strides = [1, 1]} : vector<8x256xf32> to vector<8x128xf32>
    %11 = arith.mulf %10, %8 : vector<8x128xf32>
    %12 = arith.addf %9, %11 : vector<8x128xf32>
    %cst_9 = arith.constant 0.000000e+00 : f32
    %13 = vector.broadcast %cst_9 : f32 to vector<8x128xf32>
    %14 = arith.maximumf %12, %13 : vector<8x128xf32>
    %c0_10 = arith.constant 0 : index
    %c0_11 = arith.constant 0 : index
    %15 = vector.load %arg5[%c0_10, %c0_11] : memref<128x256xf32, #tpu.memory_space<vmem>>, vector<128x256xf32>
    %cst_12 = arith.constant dense<0.000000e+00> : vector<8x256xf32>
    %16 = tpu.matmul %14, %15, %cst_12 {dimension_numbers = #tpu.dot_dimension_numbers<[1], [0], [0], [1], [0, 0, 1, 1], [], []>} : vector<8x128xf32>, vector<128x256xf32>, vector<8x256xf32> -> vector<8x256xf32>
    %c0_13 = arith.constant 0 : index
    %c0_14 = arith.constant 0 : index
    %17 = vector.load %arg6[%c0_13, %c0_14] : memref<1x256xf32, #tpu.memory_space<vmem>>, vector<1x256xf32>
    %18 = vector.broadcast %17 : vector<1x256xf32> to vector<8x256xf32>
    %19 = arith.addf %16, %18 : vector<8x256xf32>
    %c0_15 = arith.constant 0 : index
    %c0_16 = arith.constant 0 : index
    %20 = vector.load %arg7[%c0_15, %c0_16] : memref<128x128xf32, #tpu.memory_space<vmem>>, vector<128x128xf32>
    %cst_17 = arith.constant dense<0.000000e+00> : vector<8x128xf32>
    %21 = tpu.matmul %8, %20, %cst_17 {dimension_numbers = #tpu.dot_dimension_numbers<[1], [0], [0], [1], [0, 0, 1, 1], [], []>} : vector<8x128xf32>, vector<128x128xf32>, vector<8x128xf32> -> vector<8x128xf32>
    %22 = vector.extract_strided_slice %19 {offsets = [0, 0], sizes = [8, 128], strides = [1, 1]} : vector<8x256xf32> to vector<8x128xf32>
    %23 = vector.extract_strided_slice %19 {offsets = [0, 128], sizes = [8, 128], strides = [1, 1]} : vector<8x256xf32> to vector<8x128xf32>
    %24 = arith.mulf %23, %21 : vector<8x128xf32>
    %25 = arith.addf %22, %24 : vector<8x128xf32>
    %c0_18 = arith.constant 0 : index
    %c0_19 = arith.constant 0 : index
    %26 = vector.load %arg8[%c0_18, %c0_19] : memref<8x128xf32, #tpu.memory_space<vmem>>, vector<8x128xf32>
    tpu.vector_store %arg8[%c0_18, %c0_19], %25 {strides = array<i32>} : memref<8x128xf32, #tpu.memory_space<vmem>>, vector<8x128xf32>,
    return
  }
  func.func @transform_0(%arg0: i32) -> (i32, i32) {
    %c0_i32 = arith.constant 0 : i32
    %c0_i32_0 = arith.constant 0 : i32
    return %arg0, %c0_i32 : i32, i32
  }
  func.func @transform_1(%arg0: i32) -> (i32, i32) {
    %c0_i32 = arith.constant 0 : i32
    %c0_i32_0 = arith.constant 0 : i32
    %c0_i32_1 = arith.constant 0 : i32
    return %c0_i32, %c0_i32_0 : i32, i32
  }
  func.func @transform_2(%arg0: i32) -> (i32, i32) {
    %c0_i32 = arith.constant 0 : i32
    %c0_i32_0 = arith.constant 0 : i32
    %c0_i32_1 = arith.constant 0 : i32
    return %c0_i32, %c0_i32_0 : i32, i32
  }
  func.func @transform_3(%arg0: i32) -> (i32, i32) {
    %c0_i32 = arith.constant 0 : i32
    %c0_i32_0 = arith.constant 0 : i32
    %c0_i32_1 = arith.constant 0 : i32
    return %c0_i32, %c0_i32_0 : i32, i32
  }
  func.func @transform_4(%arg0: i32) -> (i32, i32) {
    %c0_i32 = arith.constant 0 : i32
    %c0_i32_0 = arith.constant 0 : i32
    %c0_i32_1 = arith.constant 0 : i32
    return %c0_i32, %c0_i32_0 : i32, i32
  }
  func.func @transform_5(%arg0: i32) -> (i32, i32) {
    %c0_i32 = arith.constant 0 : i32
    %c0_i32_0 = arith.constant 0 : i32
    %c0_i32_1 = arith.constant 0 : i32
    return %c0_i32, %c0_i32_0 : i32, i32
  }
  func.func @transform_6(%arg0: i32) -> (i32, i32) {
    %c0_i32 = arith.constant 0 : i32
    %c0_i32_0 = arith.constant 0 : i32
    %c0_i32_1 = arith.constant 0 : i32
    return %c0_i32, %c0_i32_0 : i32, i32
  }
  func.func @transform_7(%arg0: i32) -> (i32, i32) {
    %c0_i32 = arith.constant 0 : i32
    %c0_i32_0 = arith.constant 0 : i32
    return %arg0, %c0_i32 : i32, i32
  }
}

</mosaic_0001>

<bundles_post_ra>
// kernel: masked_sequential.1
= control target key start
LH: loop header
LB: loop body
LE: loop exit
PB: predicated region body
PF: predicated region fallthrough
CT: control target
= control target key end

     0   :  { %12 = vsyncpa [#allocation3], 0  ;;  %s1014_s0 = inlined_call_operand.vmem [shape: f32[8,256], index: 0, kind: input, shape index: {}]   ;;  %s1015_s1 = inlined_call_operand.hbm [shape: f32[128,256], index: 1, kind: input, shape index: {}]   ;;  %s1016_s2 = inlined_call_operand.vmem [shape: f32[1,256], index: 2, kind: input, shape index: {}]   ;;  %s1017_s3 = inlined_call_operand.hbm [shape: f32[128,128], index: 3, kind: input, shape index: {}]   ;;  %s1018_s4 = inlined_call_operand.hbm [shape: f32[128,256], index: 4, kind: input, shape index: {}]   ;;  %s1019_s5 = inlined_call_operand.vmem [shape: f32[1,256], index: 5, kind: input, shape index: {}]   ;;  %s1020_s6 = inlined_call_operand.hbm [shape: f32[128,128], index: 6, kind: input, shape index: {}]   ;;  %s1021_s7 = inlined_call_operand.hbm [shape: f32[8,128], index: 7, kind: output, shape index: {}]  }
   0x1   :  { %13 = vsyncpa [#allocation6], 0 }
   0x2   :  { %14 = vsyncpa [#allocation9], 0 }
   0x3   :  { %15 = vsyncpa [#allocation4], 0  ;;  %s855_s24 = smov [#allocation5]   ;;  %s737_s28 = scalar_lea.hbm %s1017_s3, 2048 }
   0x4   :  { %s37_s25 = sshll.u32 %s855_s24, 4  ;;  %p738_p0 = scmp.ne.s32.totalorder %s1017_s3, %s737_s28  ;;  %s38_s25 = int_to_ptr.vmem [resolvable:$true] %s37_s25 }
   0x5   :  { %p741_p1 = scmp.lt.u32.totalorder %s737_s28, %s1017_s3 }
   0x7   :  { %p743_p2 = pnand %p741_p1, %p738_p0 }
   0x9   :  { %746 = shalt.err (!%p743_p2)
}
   0xa   :  { %s747_s10 = scalar_lea.vmem %s38_s25, 2048  ;;  %p752_p4 = scmp.lt.s32.totalorder %s38_s25, %s38_s25 }
   0xb   :  { %p748_p3 = scmp.ne.s32.totalorder %s38_s25, %s747_s10  ;;  %p753_p5 = scmp.lt.s32.totalorder %s747_s10, %s747_s10 }
   0xd   :  { %p754_p6 = por %p753_p5, %p752_p4 }
   0xf   :  { %p755_p7 = pnand %p754_p6, %p748_p3 }
  0x11   :  { %758 = shalt.err (!%p755_p7)
}
  0x12   :  { %s856_s11 = smov 128   ;;  %s857_s12 = smov 8  }
  0x13   :  { %43 = dma.hbm_to_vmem [thread:$0]  %s1017_s3, 2048, %s38_s25, [#allocation6], %s856_s11, %s856_s11, %s857_s12  }
  0x14   :  { %s858_s15 = smov [#allocation2]   ;;  %s759_s19 = scalar_lea.hbm %s1015_s1, 4096 }
  0x15   :  { %s23_s16 = sshll.u32 %s858_s15, 4  ;;  %p760_p8 = scmp.ne.s32.totalorder %s1015_s1, %s759_s19  ;;  %s24_s16 = int_to_ptr.vmem [resolvable:$true] %s23_s16 }
  0x16   :  { %p763_p9 = scmp.lt.u32.totalorder %s759_s19, %s1015_s1 }
  0x18   :  { %p765_p10 = pnand %p763_p9, %p760_p8 }
  0x1a   :  { %768 = shalt.err (!%p765_p10)
}
  0x1b   :  { %s769_s24 = scalar_lea.vmem %s24_s16, 4096  ;;  %p774_p12 = scmp.lt.s32.totalorder %s24_s16, %s24_s16 }
  0x1c   :  { %p770_p11 = scmp.ne.s32.totalorder %s24_s16, %s769_s24  ;;  %p775_p13 = scmp.lt.s32.totalorder %s769_s24, %s769_s24 }
  0x1e   :  { %p776_p0 = por %p775_p13, %p774_p12 }
  0x20   :  { %p777_p1 = pnand %p776_p0, %p770_p11 }
  0x22   :  { %780 = shalt.err (!%p777_p1)
}
  0x23   :  { %s859_s3 = smov 256   ;;  %s860_s25 = smov 16  }
  0x24   :  { %29 = dma.hbm_to_vmem [thread:$0]  %s1015_s1, 4096, %s24_s16, [#allocation3], %s859_s3, %s859_s3, %s860_s25  }
  0x25   :  { %s861_s28 = smov [#allocation7]   ;;  %s862_s30 = smov [#allocation8]  }
  0x26   :  { %s49_s29 = sshll.u32 %s861_s28, 4  ;;  %s63_s8 = sshll.u32 %s862_s30, 4  ;;  %s50_s29 = int_to_ptr.vmem [resolvable:$true] %s49_s29  ;;  %s934_s8 = int_to_ptr.vmem [resolvable:$true] %s63_s8 }
  0x27   :  { %s781_s13 = scalar_lea.hbm %s1018_s4, 4096 }
  0x28   :  { %p782_p2 = scmp.ne.s32.totalorder %s1018_s4, %s781_s13  ;;  %p785_p3 = scmp.lt.u32.totalorder %s781_s13, %s1018_s4 }
  0x2a   :  { %p787_p4 = pnand %p785_p3, %p782_p2 }
  0x2c   :  { %790 = shalt.err (!%p787_p4)
}
  0x2d   :  { %s791_s1 = scalar_lea.vmem %s50_s29, 4096  ;;  %p796_p6 = scmp.lt.s32.totalorder %s50_s29, %s50_s29 }
  0x2e   :  { %p792_p5 = scmp.ne.s32.totalorder %s50_s29, %s791_s1  ;;  %p797_p7 = scmp.lt.s32.totalorder %s791_s1, %s791_s1 }
  0x30   :  { %p798_p8 = por %p797_p7, %p796_p6 }
  0x32   :  { %p799_p9 = pnand %p798_p8, %p792_p5 }
  0x34   :  { %802 = shalt.err (!%p799_p9)
}
  0x35   :  { %55 = dma.hbm_to_vmem [thread:$0]  %s1018_s4, 4096, %s50_s29, [#allocation6], %s859_s3, %s859_s3, %s860_s25  }
  0x36   :  { %s803_s22 = scalar_lea.hbm %s1020_s6, 2048 }
  0x37   :  { %p804_p10 = scmp.ne.s32.totalorder %s1020_s6, %s803_s22  ;;  %p807_p11 = scmp.lt.u32.totalorder %s803_s22, %s1020_s6 }
  0x39   :  { %p809_p12 = pnand %p807_p11, %p804_p10 }
  0x3b   :  { %812 = shalt.err (!%p809_p12)
}
  0x3c   :  { %s813_s28 = scalar_lea.vmem %s934_s8, 2048  ;;  %p818_p0 = scmp.lt.s32.totalorder %s934_s8, %s934_s8 }
  0x3d   :  { %p814_p13 = scmp.ne.s32.totalorder %s934_s8, %s813_s28  ;;  %p819_p1 = scmp.lt.s32.totalorder %s813_s28, %s813_s28 }
  0x3f   :  { %p820_p2 = por %p819_p1, %p818_p0 }
  0x41   :  { %p821_p3 = pnand %p820_p2, %p814_p13 }
  0x43   :  { %824 = shalt.err (!%p821_p3)
}
  0x44   :  { %69 = dma.hbm_to_vmem [thread:$0]  %s1020_s6, 2048, %s934_s8, [#allocation9], %s856_s11, %s856_s11, %s857_s12  }
  0x45   :  { %847 = dma.done.wait [#allocation3], 4096  }
  0x46   :  { %848 = vsyncadd [#allocation3], 4294963200 }
  0x47   :  { %849 = dma.done.wait [#allocation6], 6144  }
  0x48   :  { %850 = vsyncadd [#allocation6], 4294961152 }
  0x49   :  { %851 = dma.done.wait [#allocation9], 2048  }
  0x4a   :  { %852 = vsyncadd [#allocation9], 4294965248  ;;  %v863_v0 = vmov 0.0|0.0   ;;  %v864_v1 = vmov 0.0   ;;  %vm865_vm0 = vmmov 0   ;;  %v85_v2 = vld [vmem:[#allocation2 + $0x8] sm:$0xff] }
  0x4b   :  { %645 = vmatprep.subr.bf16.mxu1 %v863_v0  ;;  %192 = vmatprep.mubr.f32.mxu0 %v864_v1  ;;  %v87_v3 = vld [vmem:[#allocation2 + $0x18] sm:$0xff]  ;;  %v84_v4 = vld [vmem:[#allocation2] sm:$0xff]  ;;  %v86_v6 = vld [vmem:[#allocation2 + $0x10] sm:$0xff] }
  0x4c   :  { %575 = vmatprep.mubr.msk.f32.mxu1 %vm865_vm0, %v864_v1  ;;  %v613_v5 = vpack.c.bf16 %v87_v3, %v85_v2  ;;  %v199_v7 = vld [vmem:[#allocation5] sm:$0xff]  ;;  %v200_v8 = vld [vmem:[#allocation5 + $0x8] sm:$0xff]  ;;  %v615_v9 = vpack.c.bf16 %v86_v6, %v84_v4  ;;  %v91_v12 = vld [vmem:[#allocation2 + $0x38] sm:$0xff] }
  0x4d   :  { %v646_v10 = vpack.c.bf16 %v200_v8, %v199_v7  ;;  %v89_v11 = vld [vmem:[#allocation2 + $0x28] sm:$0xff]  ;;  %v88_v13 = vld [vmem:[#allocation2 + $0x20] sm:$0xff]  ;;  %v90_v15 = vld [vmem:[#allocation2 + $0x30] sm:$0xff] }
  0x4e   :  { %614 = vmatprep.subr.bf16.mxu0 %v613_v5  ;;  %v617_v14 = vpack.c.bf16 %v91_v12, %v89_v11  ;;  %v201_v16 = vld [vmem:[#allocation5 + $0x10] sm:$0xff]  ;;  %v202_v17 = vld [vmem:[#allocation5 + $0x18] sm:$0xff]  ;;  %v619_v18 = vpack.c.bf16 %v90_v15, %v88_v13  ;;  %v93_v20 = vld [vmem:[#allocation2 + $0x48] sm:$0xff] }
  0x4f   :  { %616 = vmatpush1.bf16.msra.mxu0 %v615_v9  ;;  %647 = vmatpush3.bf16.msra.mxu1 %v646_v10  ;;  %v649_v19 = vpack.c.bf16 %v202_v17, %v201_v16  ;;  %v95_v21 = vld [vmem:[#allocation2 + $0x58] sm:$0xff]  ;;  %v92_v22 = vld [vmem:[#allocation2 + $0x40] sm:$0xff]  ;;  %v94_v24 = vld [vmem:[#allocation2 + $0x50] sm:$0xff] }
  0x50   :  { %618 = vmatprep.subr.bf16.mxu0 %v617_v14  ;;  %648 = vmatprep.subr.bf16.mxu1 %v863_v0  ;;  %v621_v23 = vpack.c.bf16 %v95_v21, %v93_v20  ;;  %v203_v25 = vld [vmem:[#allocation5 + $0x20] sm:$0xff]  ;;  %v204_v26 = vld [vmem:[#allocation5 + $0x28] sm:$0xff]  ;;  %v99_v28 = vld [vmem:[#allocation2 + $0x78] sm:$0xff]  ;;  %v623_v29 = vpack.c.bf16 %v94_v24, %v92_v22 }
  0x51   :  { %v97_v27 = vld [vmem:[#allocation2 + $0x68] sm:$0xff]  ;;  %v652_v30 = vpack.c.bf16 %v204_v26, %v203_v25  ;;  %v96_v31 = vld [vmem:[#allocation2 + $0x60] sm:$0xff]  ;;  %v98_v33 = vld [vmem:[#allocation2 + $0x70] sm:$0xff] }
  0x52   :  { %v625_v32 = vpack.c.bf16 %v99_v28, %v97_v27  ;;  %v205_v34 = vld [vmem:[#allocation5 + $0x30] sm:$0xff]  ;;  %v206_v35 = vld [vmem:[#allocation5 + $0x38] sm:$0xff]  ;;  %v101_v36 = vld [vmem:[#allocation2 + $0x88] sm:$0xff]  ;;  %v627_v38 = vpack.c.bf16 %v98_v33, %v96_v31 }
  0x53   :  { %620 = vmatpush1.bf16.msra.mxu0 %v619_v18  ;;  %650 = vmatpush3.bf16.msra.mxu1 %v649_v19  ;;  %v103_v37 = vld [vmem:[#allocation2 + $0x98] sm:$0xff]  ;;  %v655_v39 = vpack.c.bf16 %v206_v35, %v205_v34  ;;  %v100_v40 = vld [vmem:[#allocation2 + $0x80] sm:$0xff]  ;;  %v102_v42 = vld [vmem:[#allocation2 + $0x90] sm:$0xff] }
  0x54   :  { %622 = vmatprep.subr.bf16.mxu0 %v621_v23  ;;  %651 = vmatprep.subr.bf16.mxu1 %v863_v0  ;;  %v629_v41 = vpack.c.bf16 %v103_v37, %v101_v36  ;;  %v207_v43 = vld [vmem:[#allocation5 + $0x40] sm:$0xff]  ;;  %v208_v44 = vld [vmem:[#allocation5 + $0x48] sm:$0xff]  ;;  %v107_v46 = vld [vmem:[#allocation2 + $0xb8] sm:$0xff]  ;;  %v631_v47 = vpack.c.bf16 %v102_v42, %v100_v40 }
  0x55   :  { %v105_v45 = vld [vmem:[#allocation2 + $0xa8] sm:$0xff]  ;;  %v658_v48 = vpack.c.bf16 %v208_v44, %v207_v43  ;;  %v104_v49 = vld [vmem:[#allocation2 + $0xa0] sm:$0xff]  ;;  %v106_v51 = vld [vmem:[#allocation2 + $0xb0] sm:$0xff] }
  0x56   :  { %v633_v50 = vpack.c.bf16 %v107_v46, %v105_v45  ;;  %v209_v52 = vld [vmem:[#allocation5 + $0x50] sm:$0xff]  ;;  %v210_v53 = vld [vmem:[#allocation5 + $0x58] sm:$0xff]  ;;  %v109_v54 = vld [vmem:[#allocation2 + $0xc8] sm:$0xff]  ;;  %v635_v56 = vpack.c.bf16 %v106_v51, %v104_v49 }
  0x57   :  { %624 = vmatpush1.bf16.msra.mxu0 %v623_v29  ;;  %653 = vmatpush3.bf16.msra.mxu1 %v652_v30  ;;  %v111_v55 = vld [vmem:[#allocation2 + $0xd8] sm:$0xff]  ;;  %v661_v57 = vpack.c.bf16 %v210_v53, %v209_v52  ;;  %v108_v58 = vld [vmem:[#allocation2 + $0xc0] sm:$0xff]  ;;  %v110_v60 = vld [vmem:[#allocation2 + $0xd0] sm:$0xff] }
  0x58   :  { %626 = vmatprep.subr.bf16.mxu0 %v625_v32  ;;  %654 = vmatprep.subr.bf16.mxu1 %v863_v0  ;;  %v637_v59 = vpack.c.bf16 %v111_v55, %v109_v54  ;;  %v211_v61 = vld [vmem:[#allocation5 + $0x60] sm:$0xff]  ;;  %v212_v62 = vld [vmem:[#allocation5 + $0x68] sm:$0xff]  ;;  %v115_v2 = vld [vmem:[#allocation2 + $0xf8] sm:$0xff]  ;;  %v639_v3 = vpack.c.bf16 %v110_v60, %v108_v58 }
  0x59   :  { %v113_v63 = vld [vmem:[#allocation2 + $0xe8] sm:$0xff]  ;;  %v664_v4 = vpack.c.bf16 %v212_v62, %v211_v61  ;;  %v112_v5 = vld [vmem:[#allocation2 + $0xe0] sm:$0xff]  ;;  %v114_v7 = vld [vmem:[#allocation2 + $0xf0] sm:$0xff] }
  0x5a   :  { %v641_v6 = vpack.c.bf16 %v115_v2, %v113_v63  ;;  %v213_v8 = vld [vmem:[#allocation5 + $0x70] sm:$0xff]  ;;  %v214_v9 = vld [vmem:[#allocation5 + $0x78] sm:$0xff]  ;;  %v289_v10 = vld [vmem:[#allocation7 + $0x8] sm:$0xff]  ;;  %v643_v12 = vpack.c.bf16 %v114_v7, %v112_v5 }
  0x5b   :  { %628 = vmatpush1.bf16.msra.mxu0 %v627_v38  ;;  %656 = vmatpush3.bf16.msra.mxu1 %v655_v39  ;;  %v291_v11 = vld [vmem:[#allocation7 + $0x18] sm:$0xff]  ;;  %v667_v13 = vpack.c.bf16 %v214_v9, %v213_v8  ;;  %v403_v14 = vld [vmem:[#allocation8] sm:$0xff]  ;;  %v404_v15 = vld [vmem:[#allocation8 + $0x8] sm:$0xff] }
  0x5c   :  { %630 = vmatprep.subr.bf16.mxu0 %v629_v41  ;;  %657 = vmatprep.subr.bf16.mxu1 %v863_v0  ;;  %v669_v16 = vpack.c.bf16 %v291_v11, %v289_v10  ;;  %v288_v17 = vld [vmem:[#allocation7] sm:$0xff]  ;;  %v290_v18 = vld [vmem:[#allocation7 + $0x10] sm:$0xff]  ;;  %v293_v19 = vld [vmem:[#allocation7 + $0x28] sm:$0xff]  ;;  %v702_v23 = vpack.c.bf16 %v404_v15, %v403_v14 }
  0x5d   :  { %v295_v20 = vld [vmem:[#allocation7 + $0x38] sm:$0xff]  ;;  %v82_v21 = vld [vmem:[%s1014_s0] sm:$0xff]  ;;  %v83_v22 = vld [vmem:[%s1014_s0 + $0x8] sm:$0xff]  ;;  %v671_v25 = vpack.c.bf16 %v290_v18, %v288_v17 }
  0x5e   :  { %v405_v24 = vld [vmem:[#allocation8 + $0x10] sm:$0xff]  ;;  %v406_v26 = vld [vmem:[#allocation8 + $0x18] sm:$0xff]  ;;  %v673_v27 = vpack.c.bf16 %v295_v20, %v293_v19  ;;  %v292_v28 = vld [vmem:[#allocation7 + $0x20] sm:$0xff] }
  0x5f   :  { %632 = vmatpush1.bf16.msra.mxu0 %v631_v47  ;;  %659 = vmatpush3.bf16.msra.mxu1 %v658_v48  ;;  %v294_v29 = vld [vmem:[#allocation7 + $0x30] sm:$0xff]  ;;  %v297_v30 = vld [vmem:[#allocation7 + $0x48] sm:$0xff]  ;;  %v299_v31 = vld [vmem:[#allocation7 + $0x58] sm:$0xff]  ;;  %v705_v32 = vpack.c.bf16 %v406_v26, %v405_v24 }
  0x60   :  { %634 = vmatprep.subr.bf16.mxu0 %v633_v50  ;;  %660 = vmatprep.subr.bf16.mxu1 %v863_v0  ;;  %v407_v33 = vld [vmem:[#allocation8 + $0x20] sm:$0xff]  ;;  %v675_v34 = vpack.c.bf16 %v294_v29, %v292_v28  ;;  %v408_v35 = vld [vmem:[#allocation8 + $0x28] sm:$0xff]  ;;  %v677_v36 = vpack.c.bf16 %v299_v31, %v297_v30  ;;  %v298_v38 = vld [vmem:[#allocation7 + $0x50] sm:$0xff] }
  0x61   :  { %v296_v37 = vld [vmem:[#allocation7 + $0x40] sm:$0xff]  ;;  %v301_v39 = vld [vmem:[#allocation7 + $0x68] sm:$0xff]  ;;  %v303_v40 = vld [vmem:[#allocation7 + $0x78] sm:$0xff]  ;;  %v708_v41 = vpack.c.bf16 %v408_v35, %v407_v33 }
  0x62   :  { %v409_v42 = vld [vmem:[#allocation8 + $0x30] sm:$0xff]  ;;  %v679_v43 = vpack.c.bf16 %v298_v38, %v296_v37  ;;  %v410_v44 = vld [vmem:[#allocation8 + $0x38] sm:$0xff]  ;;  %v681_v45 = vpack.c.bf16 %v303_v40, %v301_v39  ;;  %v300_v46 = vld [vmem:[#allocation7 + $0x60] sm:$0xff] }
  0x63   :  { %636 = vmatpush1.bf16.msra.mxu0 %v635_v56  ;;  %662 = vmatpush3.bf16.msra.mxu1 %v661_v57  ;;  %v302_v47 = vld [vmem:[#allocation7 + $0x70] sm:$0xff]  ;;  %v305_v48 = vld [vmem:[#allocation7 + $0x88] sm:$0xff]  ;;  %v307_v49 = vld [vmem:[#allocation7 + $0x98] sm:$0xff]  ;;  %v711_v50 = vpack.c.bf16 %v410_v44, %v409_v42 }
  0x64   :  { %638 = vmatprep.subr.bf16.mxu0 %v637_v59  ;;  %663 = vmatprep.subr.bf16.mxu1 %v863_v0  ;;  %v411_v51 = vld [vmem:[#allocation8 + $0x40] sm:$0xff]  ;;  %v683_v52 = vpack.c.bf16 %v302_v47, %v300_v46  ;;  %v685_v53 = vpack.c.bf16 %v307_v49, %v305_v48  ;;  %v306_v55 = vld [vmem:[#allocation7 + $0x90] sm:$0xff]  ;;  %v309_v56 = vld [vmem:[#allocation7 + $0xa8] sm:$0xff] }
  0x65   :  { %v304_v54 = vld [vmem:[#allocation7 + $0x80] sm:$0xff]  ;;  %v311_v57 = vld [vmem:[#allocation7 + $0xb8] sm:$0xff]  ;;  %v413_v59 = vld [vmem:[#allocation8 + $0x50] sm:$0xff] }
  0x66   :  { %v687_v60 = vpack.c.bf16 %v306_v55, %v304_v54  ;;  %v414_v61 = vld [vmem:[#allocation8 + $0x58] sm:$0xff]  ;;  %v689_v62 = vpack.c.bf16 %v311_v57, %v309_v56  ;;  %v308_v63 = vld [vmem:[#allocation7 + $0xa0] sm:$0xff]  ;;  %v310_v2 = vld [vmem:[#allocation7 + $0xb0] sm:$0xff] }
  0x67   :  { %640 = vmatpush1.bf16.msra.mxu0 %v639_v3  ;;  %665 = vmatpush3.bf16.msra.mxu1 %v664_v4  ;;  %v717_v3 = vpack.c.bf16 %v414_v61, %v413_v59  ;;  %v691_v4 = vpack.c.bf16 %v310_v2, %v308_v63  ;;  %v415_v5 = vld [vmem:[#allocation8 + $0x60] sm:$0xff]  ;;  %v417_v8 = vld [vmem:[#allocation8 + $0x70] sm:$0xff]  ;;  %v418_v9 = vld [vmem:[#allocation8 + $0x78] sm:$0xff] }
  0x68   :  { %642 = vmatprep.subr.bf16.mxu0 %v641_v6  ;;  %666 = vmatprep.subr.bf16.mxu1 %v863_v0  ;;  %v416_v6 = vld [vmem:[#allocation8 + $0x68] sm:$0xff]  ;;  %v723_v10 = vpack.c.bf16 %v418_v9, %v417_v8  ;;  %v312_v14 = vld [vmem:[#allocation7 + $0xc0] sm:$0xff]  ;;  %v314_v15 = vld [vmem:[#allocation7 + $0xd0] sm:$0xff] }
  0x69   :  { %v720_v7 = vpack.c.bf16 %v416_v6, %v415_v5  ;;  %v313_v11 = vld [vmem:[#allocation7 + $0xc8] sm:$0xff]  ;;  %v319_v18 = vld [vmem:[#allocation7 + $0xf8] sm:$0xff]  ;;  %v316_v20 = vld [vmem:[#allocation7 + $0xe0] sm:$0xff] }
  0x6a   :  { %v317_v17 = vld [vmem:[#allocation7 + $0xe8] sm:$0xff]  ;;  %v320_v40 = vld [vmem:[%s1019_s5] sm:$0x3] }
  0x6b   :  { %644 = vmatpush1.bf16.msra.mxu0 %v643_v12  ;;  %668 = vmatpush3.bf16.msra.mxu1 %v667_v13  ;;  %v315_v12 = vld [vmem:[#allocation7 + $0xd8] sm:$0xff]  ;;  %v697_v19 = vpack.c.bf16 %v319_v18, %v317_v17 }
  0x6c   :  { %701 = vmatprep.subr.bf16.mxu1 %v863_v0  ;;  %670 = vmatprep.subr.bf16.mxu0 %v669_v16  ;;  %v693_v13 = vpack.c.bf16 %v315_v12, %v313_v11  ;;  %v695_v16 = vpack.c.bf16 %v314_v15, %v312_v14 }
  0x6e   :  { %193 = vmatmul.mubr.f32.vlgmr.msra.gmra.mrb[0].mxu0 %v82_v21  ;;  %576 = vmatmul.mubr.f32.vlgmr.msra.gmra.mrb[0].mxu1 %v83_v22  ;;  %v318_v21 = vld [vmem:[#allocation7 + $0xf0] sm:$0xff] }
  0x6f   :  { %703 = vmatpush3.bf16.msra.mxu1 %v702_v23  ;;  %672 = vmatpush1.bf16.msra.mxu0 %v671_v25  ;;  %v699_v22 = vpack.c.bf16 %v318_v21, %v316_v20  ;;  %v116_v25 = vld [vmem:[%s1016_s2] sm:$0x3]  ;;  %s866_s2 = smov [#allocation10]  }
  0x70   :  { %704 = vmatprep.subr.bf16.mxu1 %v863_v0  ;;  %674 = vmatprep.subr.bf16.mxu0 %v673_v27  ;;  %s498_s9 = sshll.u32 %s866_s2, 4  ;;  %s499_s9 = int_to_ptr.vmem [resolvable:$true] %s498_s9 }
  0x71   :  { %610 = vmatprep.mubr.msk.f32.mxu1 %vm865_vm0, %v864_v1  ;;  %396 = vmatprep.mubr.f32.mxu0 %v864_v1  ;;  %v412_v1 = vld [vmem:[#allocation8 + $0x48] sm:$0xff]  ;;  %s825_s10 = scalar_lea.vmem %s499_s9, 128  ;;  %p830_p5 = scmp.lt.s32.totalorder %s499_s9, %s499_s9 }
  0x72   :  { %v714_v58 = vpack.c.bf16 %v412_v1, %v411_v51  ;;  %p826_p4 = scmp.ne.s32.totalorder %s499_s9, %s825_s10  ;;  %p831_p6 = scmp.lt.s32.totalorder %s825_s10, %s825_s10 }
  0x73   :  { %706 = vmatpush3.bf16.msra.mxu1 %v705_v32  ;;  %676 = vmatpush1.bf16.msra.mxu0 %v675_v34 }
  0x74   :  { %707 = vmatprep.subr.bf16.mxu1 %v863_v0  ;;  %678 = vmatprep.subr.bf16.mxu0 %v677_v36  ;;  %p832_p7 = por %p831_p6, %p830_p5 }
  0x76   :  { %p833_p8 = pnand %p832_p7, %p826_p4 }
  0x77   :  { %709 = vmatpush3.bf16.msra.mxu1 %v708_v41  ;;  %680 = vmatpush1.bf16.msra.mxu0 %v679_v43 }
  0x78   :  { %710 = vmatprep.subr.bf16.mxu1 %v863_v0  ;;  %682 = vmatprep.subr.bf16.mxu0 %v681_v45 }
  0x7b   :  { %712 = vmatpush3.bf16.msra.mxu1 %v711_v50  ;;  %684 = vmatpush1.bf16.msra.mxu0 %v683_v52 }
  0x7c   :  { %713 = vmatprep.subr.bf16.mxu1 %v863_v0  ;;  %686 = vmatprep.subr.bf16.mxu0 %v685_v53 }
  0x7f   :  { %715 = vmatpush3.bf16.msra.mxu1 %v714_v58  ;;  %688 = vmatpush1.bf16.msra.mxu0 %v687_v60 }
  0x80   :  { %716 = vmatprep.subr.bf16.mxu1 %v863_v0  ;;  %690 = vmatprep.subr.bf16.mxu0 %v689_v62 }
  0x83   :  { %718 = vmatpush3.bf16.msra.mxu1 %v717_v3  ;;  %692 = vmatpush1.bf16.msra.mxu0 %v691_v4 }
  0x84   :  { %719 = vmatprep.subr.bf16.mxu1 %v863_v0  ;;  %694 = vmatprep.subr.bf16.mxu0 %v693_v13 }
  0x87   :  { %721 = vmatpush3.bf16.msra.mxu1 %v720_v7  ;;  %696 = vmatpush1.bf16.msra.mxu0 %v695_v16 }
  0x88   :  { %722 = vmatprep.subr.bf16.mxu1 %v863_v0  ;;  %698 = vmatprep.subr.bf16.mxu0 %v697_v19  ;;  %v118_v0 = vlaneseq }
  0x8a   :  { %v119_v23 = vshrl.u32 %v118_v0, 7 }
  0x8b   :  { %724 = vmatpush3.bf16.msra.mxu1 %v723_v10  ;;  %700 = vmatpush1.bf16.msra.mxu0 %v699_v22 }
  0x8c   :  { %v124_v24 = vsub.s32 1, %v119_v23  ;;  %v120_v26 = vsub.s32 0, %v119_v23 }
  0x8e   :  { %v125_v27 = vrot.slane %v116_v25, %v124_v24  ;;  %v121_v28 = vrot.slane %v116_v25, %v120_v26  ;;  %v329_v41 = vrot.slane %v320_v40, %v124_v24  ;;  %v325_v42 = vrot.slane %v320_v40, %v120_v26 }
 0x141   :  { %v194_v29 = vpop.f32.mrb[0].mxu0  ;;  %v281_v30 = vpop.f32.mrb[0].mxu1 }
 0x142   :  { %v196_v31 = vpop.f32.mrb[1].mxu0  ;;  %v577_v32 = vpop.f32.mrb[1].mxu1  ;;  %611 = vmatmul.mubr.f32.vlgmr.msra.gmra.mrb[2].mxu1 %v281_v30  ;;  %v195_v34 = vadd.f32 %v194_v29, %v121_v28 }
 0x143   :  { %v197_v33 = vadd.f32 %v196_v31, %v125_v27 }
 0x145   :  { %v285_v35 = vmul.f32 %v281_v30, %v197_v33 }
 0x147   :  { %v286_v36 = vadd.f32 %v285_v35, %v195_v34 }
 0x149   :  { %v287_v37 = vmax.f32 %v286_v36, 0.0 }
 0x14b   :  { %397 = vmatmul.mubr.f32.vlgmr.msra.gmra.mrb[2].mxu0 %v287_v37 }
 0x215   :  { %v485_v38 = vpop.f32.mrb[2].mxu1 }
 0x216   :  { %v612_v39 = vpop.f32.mrb[3].mxu1 }
 0x21e   :  { %v398_v43 = vpop.f32.mrb[2].mxu0 }
 0x21f   :  { %v400_v44 = vpop.f32.mrb[3].mxu0  ;;  %v399_v46 = vadd.f32 %v398_v43, %v325_v42 }
 0x220   :  { %v401_v45 = vadd.f32 %v400_v44, %v329_v41 }
 0x222   :  { %v489_v47 = vmul.f32 %v485_v38, %v401_v45 }
 0x224   :  { %v490_v48 = vadd.f32 %v489_v47, %v399_v46 }
 0x226   :  { %491 = vst [vmem:[#allocation10] sm:$0xff] %v490_v48 }
 0x227   :  { %836 = shalt.err (!%p833_p8)
}
 0x228   :  { %s837_s14 = scalar_lea.hbm %s1021_s7, 128 }
 0x229   :  { %p838_p9 = scmp.ne.s32.totalorder %s1021_s7, %s837_s14  ;;  %p841_p10 = scmp.lt.u32.totalorder %s837_s14, %s1021_s7 }
 0x22b   :  { %p843_p11 = pnand %p841_p10, %p838_p9 }
 0x22d   :  { %846 = shalt.err (!%p843_p11)
}
 0x22e   :  { %501 = dma.vmem_to_hbm [thread:$0]  %s499_s9, 128, %s1021_s7, [#allocation4]  }
 0x22f   :  { %853 = dma.done.wait [#allocation4], 128  }
 0x230   :  { %854 = vsyncadd [#allocation4], 4294967168 }
 0x231   :  { %505 = vsyncpa [#allocation3], 1 }
 0x232   :  { %506 = vsyncpa [#allocation6], 1 }
 0x233   :  { %507 = vsyncpa [#allocation9], 1 }
 0x234   :  { %508 = vsyncpa [#allocation4], 1 }

</bundles_post_ra>
